<compile_context>
chip_gen: v7x
topology: tpu7x:2x2x1
jax: 0.10.0
libtpu: 0.0.40
codegen_flags: <defaults>
</compile_context>

<pallas_src>
import functools

import jax
import jax.numpy as jnp
from jax.experimental import pallas as pl
from jax.experimental.pallas import tpu as pltpu

EPS = 1e-5                 # torch.nn.BatchNorm2d default eps
MXU_DTYPE = jnp.float32    # jnp.bfloat16 on v6e/v7x (re-check the 1e-4 tolerance)


def _tap_masks(h, w):
    """Per-tap boundary-validity masks, shape (1, h*w) each (None = no mask)."""
    hw = h * w
    lane = jax.lax.broadcasted_iota(jnp.int32, (1, hw), 1)
    col = lane % w
    row_top = lane >= w            # kh == 0: output row 0 has no row above
    row_bot = lane < hw - w        # kh == 2: output row h-1 has no row below
    col_l = col >= 1               # kw == 0: output col 0 has no col to the left
    col_r = col <= w - 2           # kw == 2: output col w-1 has no col to the right
    masks = []
    for t in range(9):
        kh, kw = divmod(t, 3)
        m = None
        if kh == 0:
            m = row_top
        elif kh == 2:
            m = row_bot
        if kw == 0:
            m = col_l if m is None else jnp.logical_and(m, col_l)
        elif kw == 2:
            m = col_r if m is None else jnp.logical_and(m, col_r)
        masks.append(m)
    return masks


def _conv3x3(x, w2, masks, h, w, mxu_dtype):
    """3x3 same-padding conv of one sample as a single im2col MXU matmul.

    x:  (Cin, h*w) f32, spatial flattened onto the lane axis.
    w2: (Cout, 9*Cin) tap-major weights (MXU dtype).
    Returns (Cout, h*w) f32.

    Taps are produced by lane rotations (pltpu.roll -> XLU slot) of the
    unpadded block plus boundary masks; the (9*Cin, h*w) patch matrix lives in
    registers, so there are no misaligned scratch stores and no padded temps.
    """
    hw = h * w
    taps = []
    for t in range(9):
        kh, kw = divmod(t, 3)
        shift = ((1 - kh) * w + (1 - kw)) % hw      # jnp.roll convention
        tap = x if shift == 0 else pltpu.roll(x, shift, 1)
        if masks[t] is not None:
            tap = jnp.where(masks[t], tap, 0.0)
        taps.append(tap.astype(mxu_dtype))
    patches = jnp.concatenate(taps, axis=0)          # (9*Cin, hw), registers
    return jnp.dot(w2, patches, preferred_element_type=jnp.float32)


def _fused_kernel(x_ref, w2_ref, g_ref, b_ref, o_ref, *scratch,
                  nb, h, w, count, mxu_dtype, keep_conv):
    """Fused Conv3x3 -> BatchNorm(train) -> ReLU over a two-phase grid.

    grid = (2, NB): phase axis outermost so all conv/stat blocks (phase 0)
    finish before any BN+ReLU block (phase 1).  Both axes are sequential
    because the batch statistics are global.
    """
    if keep_conv:
        conv_sc, stats_sc, ss_sc = scratch
    else:
        stats_sc, ss_sc = scratch

    phase = pl.program_id(0)
    blk = pl.program_id(1)
    cout = w2_ref.shape[0]

    @pl.when(jnp.logical_and(phase == 0, blk == 0))
    def _init():
        stats_sc[...] = jnp.zeros_like(stats_sc)

    @pl.when(phase == 0)
    def _conv_phase():
        masks = _tap_masks(h, w)
        w2 = w2_ref[...]
        bsum = jnp.zeros((cout, 1), jnp.float32)
        bsq = jnp.zeros((cout, 1), jnp.float32)
        for n in range(nb):                                   # static unroll (small)
            acc = _conv3x3(x_ref[n], w2, masks, h, w, mxu_dtype)   # (Cout, hw) f32
            if keep_conv:
                conv_sc[blk * nb + n] = acc
            bsum = bsum + jnp.sum(acc, axis=-1, keepdims=True)
            bsq = bsq + jnp.sum(acc * acc, axis=-1, keepdims=True)
        stats_sc[0] = stats_sc[0] + bsum
        stats_sc[1] = stats_sc[1] + bsq

    @pl.when(jnp.logical_and(phase == 1, blk == 0))
    def _finalize_stats():
        # NOTE: E[x^2]-E[x]^2 is fine here (no conv bias, unit-scale activations);
        # use shifted sums for activations with large per-channel means.
        inv_count = 1.0 / count
        mean = stats_sc[0] * inv_count
        var = jnp.maximum(stats_sc[1] * inv_count - mean * mean, 0.0)
        inv = g_ref[...] * jax.lax.rsqrt(var + EPS)
        ss_sc[0] = inv                                        # scale
        ss_sc[1] = b_ref[...] - mean * inv                    # shift

    @pl.when(phase == 1)
    def _bn_relu_phase():
        scale = ss_sc[0]
        shift = ss_sc[1]
        if not keep_conv:
            masks = _tap_masks(h, w)
            w2 = w2_ref[...]
        for n in range(nb):
            if keep_conv:
                acc = conv_sc[blk * nb + n]
            else:
                acc = _conv3x3(x_ref[n], w2, masks, h, w, mxu_dtype)
            y = acc * scale + shift
            o_ref[n] = jnp.maximum(y, 0.0).astype(o_ref.dtype)


def conv_bn_relu(x_nchw, w_oihw, conv_bias, gamma, beta):
    """(N, Cin, H, W) f32 -> (N, Cout, H, W) f32: Conv3x3(pad=1) -> BN(train) -> ReLU."""
    # Conv bias before training-mode BN cancels exactly through the mean
    # subtraction, so it is not applied (forward output unchanged).
    # TODO(synk): BatchNorm running_mean/running_var buffer updates (a training
    # side effect, with unbiased variance) are not materialized; the forward
    # output does not depend on them.
    del conv_bias
    N, Cin, H, W = x_nchw.shape
    Cout = w_oihw.shape[0]
    HW = H * W

    # Host-side free / tiny re-layouts: spatial merged onto the lane axis,
    # weights tap-major along K for the im2col matmul.
    x_flat = x_nchw.reshape(N, Cin, HW)
    w2 = jnp.transpose(w_oihw, (0, 2, 3, 1)).reshape(Cout, 9 * Cin).astype(MXU_DTYPE)
    g2 = gamma.reshape(Cout, 1).astype(jnp.float32)
    b2 = beta.reshape(Cout, 1).astype(jnp.float32)

    # Batch Nb samples per grid step (amortizes ~0.35us/step overhead and makes
    # each DMA tens/hundreds of KiB).  Nb divides N so the batch statistics need
    # no padding/masking; capped at 8 to bound the in-kernel unroll.
    target_nb = max(1, (512 * 1024) // (Cout * HW * 4))
    nb_cap = max(1, min(N, target_nb, 8))
    Nb = max(d for d in range(1, nb_cap + 1) if N % d == 0)
    NB = N // Nb

    blk_bytes = 2 * Nb * (Cin + Cout) * HW * 4        # double-buffered in+out tiles
    conv_bytes = N * Cout * HW * 4                    # whole conv intermediate (f32)
    # Keep the conv intermediate VMEM-resident only when it comfortably fits the
    # tightest generation (v7x: 64 MiB physical); otherwise recompute it in
    # phase 1 (still no HBM round trip of the intermediate).
    keep_conv = (conv_bytes + blk_bytes) <= (40 << 20)
    needed = (conv_bytes if keep_conv else 0) + blk_bytes + (1 << 20)
    vmem_limit = int(min(48 << 20, max(16 << 20, 2 * needed)))

    scratch = []
    if keep_conv:
        scratch.append(pltpu.VMEM((N, Cout, HW), jnp.float32))   # conv intermediate
    scratch.append(pltpu.VMEM((2, Cout, 1), jnp.float32))        # [sum, sumsq] partials
    scratch.append(pltpu.VMEM((2, Cout, 1), jnp.float32))        # [scale, shift]

    if keep_conv:
        x_map = lambda p, b: (b * (1 - p), 0, 0)     # phase 1 never reads x
    else:
        x_map = lambda p, b: (b, 0, 0)               # phase 1 re-reads x, recomputes

    kernel = functools.partial(
        _fused_kernel, nb=Nb, h=H, w=W, count=float(N * HW),
        mxu_dtype=MXU_DTYPE, keep_conv=keep_conv)

    out_flat = pl.pallas_call(
        kernel,
        grid=(2, NB),                                # (phase, batch block)
        in_specs=[
            pl.BlockSpec((Nb, Cin, HW), x_map),
            pl.BlockSpec((Cout, 9 * Cin), lambda p, b: (0, 0)),   # VMEM-resident
            pl.BlockSpec((Cout, 1), lambda p, b: (0, 0)),         # gamma
            pl.BlockSpec((Cout, 1), lambda p, b: (0, 0)),         # beta
        ],
        # Output block index is pinned to 0 during phase 0 (nothing is written,
        # so no writeback traffic) and follows the batch block during phase 1.
        out_specs=pl.BlockSpec((Nb, Cout, HW), lambda p, b: (b * p, 0, 0)),
        out_shape=jax.ShapeDtypeStruct((N, Cout, HW), jnp.float32),
        scratch_shapes=scratch,
        compiler_params=pltpu.CompilerParams(
            # Phase 1 depends on all of phase 0 (global batch stats), so both
            # axes are sequential.
            # TODO(synk): megacore sharding would need an explicit cross-core
            # reduction of the BN partials (CMEM / semaphores).
            dimension_semantics=("arbitrary", "arbitrary"),
            vmem_limit_bytes=vmem_limit,
        ),
    )(x_flat, w2, g2, b2)

    # Free reshape back: output is produced directly in its final NCHW layout.
    return out_flat.reshape(N, Cout, H, W)


def _reference(x_nchw, w_oihw, conv_bias, gamma, beta):
    conv = jax.lax.conv_general_dilated(
        x_nchw, w_oihw, window_strides=(1, 1), padding=((1, 1), (1, 1)),
        dimension_numbers=('NCHW', 'OIHW', 'NCHW'))
    conv = conv + conv_bias.reshape(1, -1, 1, 1)
    mean = jnp.mean(conv, axis=(0, 2, 3), keepdims=True)
    var = jnp.mean((conv - mean) ** 2, axis=(0, 2, 3), keepdims=True)
    y = (conv - mean) * jax.lax.rsqrt(var + EPS)
    y = y * gamma.reshape(1, -1, 1, 1) + beta.reshape(1, -1, 1, 1)
    return jnp.maximum(y, 0.0)


if __name__ == "__main__":
    key = jax.random.PRNGKey(0)
    N, Cin, H, W = 2, 4, 16, 16
    Cout = 8

    k1, k2, k3, k4, k5 = jax.random.split(key, 5)
    x = jax.random.normal(k1, (N, Cin, H, W), jnp.float32)
    w = jax.random.normal(k2, (Cout, Cin, 3, 3), jnp.float32) * 0.1
    conv_bias = jax.random.normal(k3, (Cout,), jnp.float32) * 0.1
    gamma = 1.0 + 0.1 * jax.random.normal(k4, (Cout,), jnp.float32)
    beta = 0.1 * jax.random.normal(k5, (Cout,), jnp.float32)

    fn = jax.jit(conv_bn_relu)
    out = jax.block_until_ready(fn(x, w, conv_bias, gamma, beta))

    ref = _reference(x, w, conv_bias, gamma, beta)
    assert out.shape == (N, Cout, H, W)
    assert jnp.allclose(out, ref, atol=1e-4, rtol=1e-4), "mismatch vs reference"

    print("KERNEL_OK")
</pallas_src>

<mosaic_0001>
module attributes {stable_mosaic.version = 11 : i64} {
  func.func @_fused_kernel(%arg0: i32, %arg1: i32, %arg2: memref<2x4x256xf32, #tpu.memory_space<vmem>>, %arg3: memref<8x36xf32, #tpu.memory_space<vmem>>, %arg4: memref<8x1xf32, #tpu.memory_space<vmem>>, %arg5: memref<8x1xf32, #tpu.memory_space<vmem>>, %arg6: memref<2x8x256xf32, #tpu.memory_space<vmem>>, %arg7: memref<2x8x256xf32, #tpu.memory_space<vmem>>, %arg8: memref<2x8x1xf32, #tpu.memory_space<vmem>>, %arg9: memref<2x8x1xf32, #tpu.memory_space<vmem>>) attributes {dimension_semantics = [#tpu.dimension_semantics<arbitrary>, #tpu.dimension_semantics<arbitrary>], iteration_bounds = array<i64: 2, 1>, scalar_prefetch = 0 : i64, scratch_operands = 3 : i64, tpu.core_type = #tpu.core_type<tc>, window_params = [{transform_indices = @transform_0, window_bounds = array<i64: 2, 4, 256>}, {pipeline_mode = #tpu.pipeline_mode<synchronous>, transform_indices = @transform_1, window_bounds = array<i64: 8, 36>}, {pipeline_mode = #tpu.pipeline_mode<synchronous>, transform_indices = @transform_2, window_bounds = array<i64: 8, 1>}, {pipeline_mode = #tpu.pipeline_mode<synchronous>, transform_indices = @transform_3, window_bounds = array<i64: 8, 1>}, {transform_indices = @transform_4, window_bounds = array<i64: 2, 8, 256>}]} {
    %c0_i32 = arith.constant 0 : i32
    %0 = arith.cmpi eq, %arg0, %c0_i32 : i32
    %c0_i32_0 = arith.constant 0 : i32
    %1 = arith.cmpi eq, %arg1, %c0_i32_0 : i32
    %2 = arith.andi %0, %1 : i1
    %3 = arith.extui %2 : i1 to i32
    %c0_i32_1 = arith.constant 0 : i32
    %4 = arith.cmpi ne, %3, %c0_i32_1 : i32
    scf.if %4 {
      %cst = arith.constant 0.000000e+00 : f32
      %16 = vector.broadcast %cst : f32 to vector<2x8x1xf32>
      %c0 = arith.constant 0 : index
      %c0_8 = arith.constant 0 : index
      %c0_9 = arith.constant 0 : index
      %17 = vector.load %arg8[%c0, %c0_8, %c0_9] : memref<2x8x1xf32, #tpu.memory_space<vmem>>, vector<2x8x1xf32>
      tpu.vector_store %arg8[%c0, %c0_8, %c0_9], %16 {strides = array<i32>} : memref<2x8x1xf32, #tpu.memory_space<vmem>>, vector<2x8x1xf32>,
    } else {
    }
    %c0_i32_2 = arith.constant 0 : i32
    %5 = arith.cmpi eq, %arg0, %c0_i32_2 : i32
    %6 = arith.extui %5 : i1 to i32
    %c0_i32_3 = arith.constant 0 : i32
    %7 = arith.cmpi ne, %6, %c0_i32_3 : i32
    scf.if %7 {
      %16 = tpu.iota {dimensions = array<i32: 1>} : vector<1x256xi32>
      %c16_i32 = arith.constant 16 : i32
      %c0_i32_8 = arith.constant 0 : i32
      %17 = arith.cmpi eq, %c16_i32, %c0_i32_8 : i32
      %c1_i32_9 = arith.constant 1 : i32
      %18 = arith.select %17, %c1_i32_9, %c16_i32 : i32
      %19 = vector.broadcast %18 : i32 to vector<1x256xi32>
      %20 = arith.remsi %16, %19 : vector<1x256xi32>
      %c0_i32_10 = arith.constant 0 : i32
      %21 = vector.broadcast %c0_i32_10 : i32 to vector<1x256xi32>
      %22 = arith.cmpi ne, %20, %21 : vector<1x256xi32>
      %c0_i32_11 = arith.constant 0 : i32
      %23 = vector.broadcast %c0_i32_11 : i32 to vector<1x256xi32>
      %24 = arith.cmpi slt, %20, %23 : vector<1x256xi32>
      %c0_i32_12 = arith.constant 0 : i32
      %25 = arith.cmpi slt, %18, %c0_i32_12 : i32
      %26 = vector.broadcast %25 : i1 to vector<1x256xi1>
      %27 = vector.broadcast %26 : vector<1x256xi1> to vector<1x256xi1>
      %28 = arith.xori %24, %27 : vector<1x256xi1>
      %29 = arith.andi %28, %22 : vector<1x256xi1>
      %30 = vector.broadcast %18 : i32 to vector<1x256xi32>
      %31 = arith.addi %20, %30 : vector<1x256xi32>
      %32 = arith.select %29, %31, %20 : vector<1x256xi1>, vector<1x256xi32>
      %c16_i32_13 = arith.constant 16 : i32
      %33 = vector.broadcast %c16_i32_13 : i32 to vector<1x256xi32>
      %34 = arith.cmpi sge, %16, %33 : vector<1x256xi32>
      %c240_i32 = arith.constant 240 : i32
      %35 = vector.broadcast %c240_i32 : i32 to vector<1x256xi32>
      %36 = arith.cmpi slt, %16, %35 : vector<1x256xi32>
      %c1_i32_14 = arith.constant 1 : i32
      %37 = vector.broadcast %c1_i32_14 : i32 to vector<1x256xi32>
      %38 = arith.cmpi sge, %32, %37 : vector<1x256xi32>
      %c14_i32 = arith.constant 14 : i32
      %39 = vector.broadcast %c14_i32 : i32 to vector<1x256xi32>
      %40 = arith.cmpi sle, %32, %39 : vector<1x256xi32>
      %41 = arith.andi %34, %38 : vector<1x256xi1>
      %42 = arith.andi %34, %40 : vector<1x256xi1>
      %43 = arith.andi %36, %38 : vector<1x256xi1>
      %44 = arith.andi %36, %40 : vector<1x256xi1>
      %c0 = arith.constant 0 : index
      %c0_15 = arith.constant 0 : index
      %45 = vector.load %arg3[%c0, %c0_15] : memref<8x36xf32, #tpu.memory_space<vmem>>, vector<8x36xf32>
      %cst = arith.constant 0.000000e+00 : f32
      %46 = vector.broadcast %cst : f32 to vector<8x1xf32>
      %cst_16 = arith.constant 0.000000e+00 : f32
      %47 = vector.broadcast %cst_16 : f32 to vector<8x1xf32>
      %c0_17 = arith.constant 0 : index
      %c0_18 = arith.constant 0 : index
      %c0_19 = arith.constant 0 : index
      %48 = vector.load %arg2[%c0_17, %c0_18, %c0_19] : memref<2x4x256xf32, #tpu.memory_space<vmem>>, vector<1x4x256xf32>
      %49 = vector.shape_cast %48 : vector<1x4x256xf32> to vector<4x256xf32>
      %c17_i32 = arith.constant 17 : i32
      %50 = tpu.dynamic_rotate %49 by %c17_i32 dim 1 : vector<4x256xf32>, i32 -> vector<4x256xf32>
      %cst_20 = arith.constant 0.000000e+00 : f32
      %51 = vector.shape_cast %41 : vector<1x256xi1> to vector<1x256xi1>
      %52 = vector.broadcast %51 : vector<1x256xi1> to vector<4x256xi1>
      %53 = vector.broadcast %cst_20 : f32 to vector<4x256xf32>
      %54 = arith.select %52, %50, %53 : vector<4x256xi1>, vector<4x256xf32>
      %c16_i32_21 = arith.constant 16 : i32
      %55 = tpu.dynamic_rotate %49 by %c16_i32_21 dim 1 : vector<4x256xf32>, i32 -> vector<4x256xf32>
      %cst_22 = arith.constant 0.000000e+00 : f32
      %56 = vector.shape_cast %34 : vector<1x256xi1> to vector<1x256xi1>
      %57 = vector.broadcast %56 : vector<1x256xi1> to vector<4x256xi1>
      %58 = vector.broadcast %cst_22 : f32 to vector<4x256xf32>
      %59 = arith.select %57, %55, %58 : vector<4x256xi1>, vector<4x256xf32>
      %c15_i32 = arith.constant 15 : i32
      %60 = tpu.dynamic_rotate %49 by %c15_i32 dim 1 : vector<4x256xf32>, i32 -> vector<4x256xf32>
      %cst_23 = arith.constant 0.000000e+00 : f32
      %61 = vector.shape_cast %42 : vector<1x256xi1> to vector<1x256xi1>
      %62 = vector.broadcast %61 : vector<1x256xi1> to vector<4x256xi1>
      %63 = vector.broadcast %cst_23 : f32 to vector<4x256xf32>
      %64 = arith.select %62, %60, %63 : vector<4x256xi1>, vector<4x256xf32>
      %c1_i32_24 = arith.constant 1 : i32
      %65 = tpu.dynamic_rotate %49 by %c1_i32_24 dim 1 : vector<4x256xf32>, i32 -> vector<4x256xf32>
      %cst_25 = arith.constant 0.000000e+00 : f32
      %66 = vector.shape_cast %38 : vector<1x256xi1> to vector<1x256xi1>
      %67 = vector.broadcast %66 : vector<1x256xi1> to vector<4x256xi1>
      %68 = vector.broadcast %cst_25 : f32 to vector<4x256xf32>
      %69 = arith.select %67, %65, %68 : vector<4x256xi1>, vector<4x256xf32>
      %c255_i32 = arith.constant 255 : i32
      %70 = tpu.dynamic_rotate %49 by %c255_i32 dim 1 : vector<4x256xf32>, i32 -> vector<4x256xf32>
      %cst_26 = arith.constant 0.000000e+00 : f32
      %71 = vector.shape_cast %40 : vector<1x256xi1> to vector<1x256xi1>
      %72 = vector.broadcast %71 : vector<1x256xi1> to vector<4x256xi1>
      %73 = vector.broadcast %cst_26 : f32 to vector<4x256xf32>
      %74 = arith.select %72, %70, %73 : vector<4x256xi1>, vector<4x256xf32>
      %c241_i32 = arith.constant 241 : i32
      %75 = tpu.dynamic_rotate %49 by %c241_i32 dim 1 : vector<4x256xf32>, i32 -> vector<4x256xf32>
      %cst_27 = arith.constant 0.000000e+00 : f32
      %76 = vector.shape_cast %43 : vector<1x256xi1> to vector<1x256xi1>
      %77 = vector.broadcast %76 : vector<1x256xi1> to vector<4x256xi1>
      %78 = vector.broadcast %cst_27 : f32 to vector<4x256xf32>
      %79 = arith.select %77, %75, %78 : vector<4x256xi1>, vector<4x256xf32>
      %c240_i32_28 = arith.constant 240 : i32
      %80 = tpu.dynamic_rotate %49 by %c240_i32_28 dim 1 : vector<4x256xf32>, i32 -> vector<4x256xf32>
      %cst_29 = arith.constant 0.000000e+00 : f32
      %81 = vector.shape_cast %36 : vector<1x256xi1> to vector<1x256xi1>
      %82 = vector.broadcast %81 : vector<1x256xi1> to vector<4x256xi1>
      %83 = vector.broadcast %cst_29 : f32 to vector<4x256xf32>
      %84 = arith.select %82, %80, %83 : vector<4x256xi1>, vector<4x256xf32>
      %c239_i32 = arith.constant 239 : i32
      %85 = tpu.dynamic_rotate %49 by %c239_i32 dim 1 : vector<4x256xf32>, i32 -> vector<4x256xf32>
      %cst_30 = arith.constant 0.000000e+00 : f32
      %86 = vector.shape_cast %44 : vector<1x256xi1> to vector<1x256xi1>
      %87 = vector.broadcast %86 : vector<1x256xi1> to vector<4x256xi1>
      %88 = vector.broadcast %cst_30 : f32 to vector<4x256xf32>
      %89 = arith.select %87, %85, %88 : vector<4x256xi1>, vector<4x256xf32>
      %90 = tpu.concatenate %54, %59, %64, %69, %49, %74, %79, %84, %89 in 0 : vector<4x256xf32>, vector<4x256xf32>, vector<4x256xf32>, vector<4x256xf32>, vector<4x256xf32>, vector<4x256xf32>, vector<4x256xf32>, vector<4x256xf32>, vector<4x256xf32> -> vector<36x256xf32>
      %cst_31 = arith.constant dense<0.000000e+00> : vector<8x256xf32>
      %91 = tpu.matmul %45, %90, %cst_31 {dimension_numbers = #tpu.dot_dimension_numbers<[1], [0], [0], [1], [0, 0, 1, 1], [], []>} : vector<8x36xf32>, vector<36x256xf32>, vector<8x256xf32> -> vector<8x256xf32>
      %c2_i32 = arith.constant 2 : i32
      %92 = arith.muli %arg1, %c2_i32 : i32
      %c0_i32_32 = arith.constant 0 : i32
      %93 = arith.addi %92, %c0_i32_32 : i32
      %94 = arith.index_cast %93 : i32 to index
      %c0_33 = arith.constant 0 : index
      %c0_34 = arith.constant 0 : index
      %95 = vector.load %arg7[%94, %c0_33, %c0_34] : memref<2x8x256xf32, #tpu.memory_space<vmem>>, vector<1x8x256xf32>
      %96 = vector.shape_cast %95 : vector<1x8x256xf32> to vector<8x256xf32>
      %97 = vector.shape_cast %91 : vector<8x256xf32> to vector<1x8x256xf32>
      tpu.vector_store %arg7[%94, %c0_33, %c0_34], %97 {strides = array<i32>} : memref<2x8x256xf32, #tpu.memory_space<vmem>>, vector<1x8x256xf32>,
      %cst_35 = arith.constant dense<0.000000e+00> : vector<8xf32>
      %98 = vector.multi_reduction <add>, %91, %cst_35 [1] : vector<8x256xf32> to vector<8xf32>
      %99 = vector.shape_cast %98 : vector<8xf32> to vector<8x1xf32>
      %100 = arith.addf %46, %99 : vector<8x1xf32>
      %101 = arith.mulf %91, %91 : vector<8x256xf32>
      %cst_36 = arith.constant dense<0.000000e+00> : vector<8xf32>
      %102 = vector.multi_reduction <add>, %101, %cst_36 [1] : vector<8x256xf32> to vector<8xf32>
      %103 = vector.shape_cast %102 : vector<8xf32> to vector<8x1xf32>
      %104 = arith.addf %47, %103 : vector<8x1xf32>
      %c1 = arith.constant 1 : index
      %c0_37 = arith.constant 0 : index
      %c0_38 = arith.constant 0 : index
      %105 = vector.load %arg2[%c1, %c0_37, %c0_38] : memref<2x4x256xf32, #tpu.memory_space<vmem>>, vector<1x4x256xf32>
      %106 = vector.shape_cast %105 : vector<1x4x256xf32> to vector<4x256xf32>
      %c17_i32_39 = arith.constant 17 : i32
      %107 = tpu.dynamic_rotate %106 by %c17_i32_39 dim 1 : vector<4x256xf32>, i32 -> vector<4x256xf32>
      %cst_40 = arith.constant 0.000000e+00 : f32
      %108 = vector.shape_cast %41 : vector<1x256xi1> to vector<1x256xi1>
      %109 = vector.broadcast %108 : vector<1x256xi1> to vector<4x256xi1>
      %110 = vector.broadcast %cst_40 : f32 to vector<4x256xf32>
      %111 = arith.select %109, %107, %110 : vector<4x256xi1>, vector<4x256xf32>
      %c16_i32_41 = arith.constant 16 : i32
      %112 = tpu.dynamic_rotate %106 by %c16_i32_41 dim 1 : vector<4x256xf32>, i32 -> vector<4x256xf32>
      %cst_42 = arith.constant 0.000000e+00 : f32
      %113 = vector.shape_cast %34 : vector<1x256xi1> to vector<1x256xi1>
      %114 = vector.broadcast %113 : vector<1x256xi1> to vector<4x256xi1>
      %115 = vector.broadcast %cst_42 : f32 to vector<4x256xf32>
      %116 = arith.select %114, %112, %115 : vector<4x256xi1>, vector<4x256xf32>
      %c15_i32_43 = arith.constant 15 : i32
      %117 = tpu.dynamic_rotate %106 by %c15_i32_43 dim 1 : vector<4x256xf32>, i32 -> vector<4x256xf32>
      %cst_44 = arith.constant 0.000000e+00 : f32
      %118 = vector.shape_cast %42 : vector<1x256xi1> to vector<1x256xi1>
      %119 = vector.broadcast %118 : vector<1x256xi1> to vector<4x256xi1>
      %120 = vector.broadcast %cst_44 : f32 to vector<4x256xf32>
      %121 = arith.select %119, %117, %120 : vector<4x256xi1>, vector<4x256xf32>
      %c1_i32_45 = arith.constant 1 : i32
      %122 = tpu.dynamic_rotate %106 by %c1_i32_45 dim 1 : vector<4x256xf32>, i32 -> vector<4x256xf32>
      %cst_46 = arith.constant 0.000000e+00 : f32
      %123 = vector.shape_cast %38 : vector<1x256xi1> to vector<1x256xi1>
      %124 = vector.broadcast %123 : vector<1x256xi1> to vector<4x256xi1>
      %125 = vector.broadcast %cst_46 : f32 to vector<4x256xf32>
      %126 = arith.select %124, %122, %125 : vector<4x256xi1>, vector<4x256xf32>
      %c255_i32_47 = arith.constant 255 : i32
      %127 = tpu.dynamic_rotate %106 by %c255_i32_47 dim 1 : vector<4x256xf32>, i32 -> vector<4x256xf32>
      %cst_48 = arith.constant 0.000000e+00 : f32
      %128 = vector.shape_cast %40 : vector<1x256xi1> to vector<1x256xi1>
      %129 = vector.broadcast %128 : vector<1x256xi1> to vector<4x256xi1>
      %130 = vector.broadcast %cst_48 : f32 to vector<4x256xf32>
      %131 = arith.select %129, %127, %130 : vector<4x256xi1>, vector<4x256xf32>
      %c241_i32_49 = arith.constant 241 : i32
      %132 = tpu.dynamic_rotate %106 by %c241_i32_49 dim 1 : vector<4x256xf32>, i32 -> vector<4x256xf32>
      %cst_50 = arith.constant 0.000000e+00 : f32
      %133 = vector.shape_cast %43 : vector<1x256xi1> to vector<1x256xi1>
      %134 = vector.broadcast %133 : vector<1x256xi1> to vector<4x256xi1>
      %135 = vector.broadcast %cst_50 : f32 to vector<4x256xf32>
      %136 = arith.select %134, %132, %135 : vector<4x256xi1>, vector<4x256xf32>
      %c240_i32_51 = arith.constant 240 : i32
      %137 = tpu.dynamic_rotate %106 by %c240_i32_51 dim 1 : vector<4x256xf32>, i32 -> vector<4x256xf32>
      %cst_52 = arith.constant 0.000000e+00 : f32
      %138 = vector.shape_cast %36 : vector<1x256xi1> to vector<1x256xi1>
      %139 = vector.broadcast %138 : vector<1x256xi1> to vector<4x256xi1>
      %140 = vector.broadcast %cst_52 : f32 to vector<4x256xf32>
      %141 = arith.select %139, %137, %140 : vector<4x256xi1>, vector<4x256xf32>
      %c239_i32_53 = arith.constant 239 : i32
      %142 = tpu.dynamic_rotate %106 by %c239_i32_53 dim 1 : vector<4x256xf32>, i32 -> vector<4x256xf32>
      %cst_54 = arith.constant 0.000000e+00 : f32
      %143 = vector.shape_cast %44 : vector<1x256xi1> to vector<1x256xi1>
      %144 = vector.broadcast %143 : vector<1x256xi1> to vector<4x256xi1>
      %145 = vector.broadcast %cst_54 : f32 to vector<4x256xf32>
      %146 = arith.select %144, %142, %145 : vector<4x256xi1>, vector<4x256xf32>
      %147 = tpu.concatenate %111, %116, %121, %126, %106, %131, %136, %141, %146 in 0 : vector<4x256xf32>, vector<4x256xf32>, vector<4x256xf32>, vector<4x256xf32>, vector<4x256xf32>, vector<4x256xf32>, vector<4x256xf32>, vector<4x256xf32>, vector<4x256xf32> -> vector<36x256xf32>
      %cst_55 = arith.constant dense<0.000000e+00> : vector<8x256xf32>
      %148 = tpu.matmul %45, %147, %cst_55 {dimension_numbers = #tpu.dot_dimension_numbers<[1], [0], [0], [1], [0, 0, 1, 1], [], []>} : vector<8x36xf32>, vector<36x256xf32>, vector<8x256xf32> -> vector<8x256xf32>
      %c2_i32_56 = arith.constant 2 : i32
      %149 = arith.muli %arg1, %c2_i32_56 : i32
      %c1_i32_57 = arith.constant 1 : i32
      %150 = arith.addi %149, %c1_i32_57 : i32
      %151 = arith.index_cast %150 : i32 to index
      %c0_58 = arith.constant 0 : index
      %c0_59 = arith.constant 0 : index
      %152 = vector.load %arg7[%151, %c0_58, %c0_59] : memref<2x8x256xf32, #tpu.memory_space<vmem>>, vector<1x8x256xf32>
      %153 = vector.shape_cast %152 : vector<1x8x256xf32> to vector<8x256xf32>
      %154 = vector.shape_cast %148 : vector<8x256xf32> to vector<1x8x256xf32>
      tpu.vector_store %arg7[%151, %c0_58, %c0_59], %154 {strides = array<i32>} : memref<2x8x256xf32, #tpu.memory_space<vmem>>, vector<1x8x256xf32>,
      %cst_60 = arith.constant dense<0.000000e+00> : vector<8xf32>
      %155 = vector.multi_reduction <add>, %148, %cst_60 [1] : vector<8x256xf32> to vector<8xf32>
      %156 = vector.shape_cast %155 : vector<8xf32> to vector<8x1xf32>
      %157 = arith.addf %100, %156 : vector<8x1xf32>
      %158 = arith.mulf %148, %148 : vector<8x256xf32>
      %cst_61 = arith.constant dense<0.000000e+00> : vector<8xf32>
      %159 = vector.multi_reduction <add>, %158, %cst_61 [1] : vector<8x256xf32> to vector<8xf32>
      %160 = vector.shape_cast %159 : vector<8xf32> to vector<8x1xf32>
      %161 = arith.addf %104, %160 : vector<8x1xf32>
      %c0_62 = arith.constant 0 : index
      %c0_63 = arith.constant 0 : index
      %c0_64 = arith.constant 0 : index
      %162 = vector.load %arg8[%c0_62, %c0_63, %c0_64] : memref<2x8x1xf32, #tpu.memory_space<vmem>>, vector<1x8x1xf32>
      %163 = vector.shape_cast %162 : vector<1x8x1xf32> to vector<8x1xf32>
      %164 = arith.addf %163, %157 : vector<8x1xf32>
      %c0_65 = arith.constant 0 : index
      %c0_66 = arith.constant 0 : index
      %c0_67 = arith.constant 0 : index
      %165 = vector.load %arg8[%c0_65, %c0_66, %c0_67] : memref<2x8x1xf32, #tpu.memory_space<vmem>>, vector<1x8x1xf32>
      %166 = vector.shape_cast %165 : vector<1x8x1xf32> to vector<8x1xf32>
      %167 = vector.shape_cast %164 : vector<8x1xf32> to vector<1x8x1xf32>
      tpu.vector_store %arg8[%c0_65, %c0_66, %c0_67], %167 {strides = array<i32>} : memref<2x8x1xf32, #tpu.memory_space<vmem>>, vector<1x8x1xf32>,
      %c1_68 = arith.constant 1 : index
      %c0_69 = arith.constant 0 : index
      %c0_70 = arith.constant 0 : index
      %168 = vector.load %arg8[%c1_68, %c0_69, %c0_70] : memref<2x8x1xf32, #tpu.memory_space<vmem>>, vector<1x8x1xf32>
      %169 = vector.shape_cast %168 : vector<1x8x1xf32> to vector<8x1xf32>
      %170 = arith.addf %169, %161 : vector<8x1xf32>
      %c1_71 = arith.constant 1 : index
      %c0_72 = arith.constant 0 : index
      %c0_73 = arith.constant 0 : index
      %171 = vector.load %arg8[%c1_71, %c0_72, %c0_73] : memref<2x8x1xf32, #tpu.memory_space<vmem>>, vector<1x8x1xf32>
      %172 = vector.shape_cast %171 : vector<1x8x1xf32> to vector<8x1xf32>
      %173 = vector.shape_cast %170 : vector<8x1xf32> to vector<1x8x1xf32>
      tpu.vector_store %arg8[%c1_71, %c0_72, %c0_73], %173 {strides = array<i32>} : memref<2x8x1xf32, #tpu.memory_space<vmem>>, vector<1x8x1xf32>,
    } else {
    }
    %c1_i32 = arith.constant 1 : i32
    %8 = arith.cmpi eq, %arg0, %c1_i32 : i32
    %c0_i32_4 = arith.constant 0 : i32
    %9 = arith.cmpi eq, %arg1, %c0_i32_4 : i32
    %10 = arith.andi %8, %9 : i1
    %11 = arith.extui %10 : i1 to i32
    %c0_i32_5 = arith.constant 0 : i32
    %12 = arith.cmpi ne, %11, %c0_i32_5 : i32
    scf.if %12 {
      %c0 = arith.constant 0 : index
      %c0_8 = arith.constant 0 : index
      %c0_9 = arith.constant 0 : index
      %16 = vector.load %arg8[%c0, %c0_8, %c0_9] : memref<2x8x1xf32, #tpu.memory_space<vmem>>, vector<1x8x1xf32>
      %17 = vector.shape_cast %16 : vector<1x8x1xf32> to vector<8x1xf32>
      %cst = arith.constant 0.001953125 : f32
      %18 = vector.broadcast %cst : f32 to vector<8x1xf32>
      %19 = arith.mulf %17, %18 : vector<8x1xf32>
      %c1 = arith.constant 1 : index
      %c0_10 = arith.constant 0 : index
      %c0_11 = arith.constant 0 : index
      %20 = vector.load %arg8[%c1, %c0_10, %c0_11] : memref<2x8x1xf32, #tpu.memory_space<vmem>>, vector<1x8x1xf32>
      %21 = vector.shape_cast %20 : vector<1x8x1xf32> to vector<8x1xf32>
      %cst_12 = arith.constant 0.001953125 : f32
      %22 = vector.broadcast %cst_12 : f32 to vector<8x1xf32>
      %23 = arith.mulf %21, %22 : vector<8x1xf32>
      %24 = arith.mulf %19, %19 : vector<8x1xf32>
      %25 = arith.subf %23, %24 : vector<8x1xf32>
      %cst_13 = arith.constant 0.000000e+00 : f32
      %26 = vector.broadcast %cst_13 : f32 to vector<8x1xf32>
      %27 = arith.maximumf %25, %26 : vector<8x1xf32>
      %c0_14 = arith.constant 0 : index
      %c0_15 = arith.constant 0 : index
      %28 = vector.load %arg4[%c0_14, %c0_15] : memref<8x1xf32, #tpu.memory_space<vmem>>, vector<8x1xf32>
      %cst_16 = arith.constant 9.99999974E-6 : f32
      %29 = vector.broadcast %cst_16 : f32 to vector<8x1xf32>
      %30 = arith.addf %27, %29 : vector<8x1xf32>
      %31 = math.rsqrt %30 : vector<8x1xf32>
      %32 = arith.mulf %28, %31 : vector<8x1xf32>
      %c0_17 = arith.constant 0 : index
      %c0_18 = arith.constant 0 : index
      %c0_19 = arith.constant 0 : index
      %33 = vector.load %arg9[%c0_17, %c0_18, %c0_19] : memref<2x8x1xf32, #tpu.memory_space<vmem>>, vector<1x8x1xf32>
      %34 = vector.shape_cast %33 : vector<1x8x1xf32> to vector<8x1xf32>
      %35 = vector.shape_cast %32 : vector<8x1xf32> to vector<1x8x1xf32>
      tpu.vector_store %arg9[%c0_17, %c0_18, %c0_19], %35 {strides = array<i32>} : memref<2x8x1xf32, #tpu.memory_space<vmem>>, vector<1x8x1xf32>,
      %c0_20 = arith.constant 0 : index
      %c0_21 = arith.constant 0 : index
      %36 = vector.load %arg5[%c0_20, %c0_21] : memref<8x1xf32, #tpu.memory_space<vmem>>, vector<8x1xf32>
      %37 = arith.mulf %19, %32 : vector<8x1xf32>
      %38 = arith.subf %36, %37 : vector<8x1xf32>
      %c1_22 = arith.constant 1 : index
      %c0_23 = arith.constant 0 : index
      %c0_24 = arith.constant 0 : index
      %39 = vector.load %arg9[%c1_22, %c0_23, %c0_24] : memref<2x8x1xf32, #tpu.memory_space<vmem>>, vector<1x8x1xf32>
      %40 = vector.shape_cast %39 : vector<1x8x1xf32> to vector<8x1xf32>
      %41 = vector.shape_cast %38 : vector<8x1xf32> to vector<1x8x1xf32>
      tpu.vector_store %arg9[%c1_22, %c0_23, %c0_24], %41 {strides = array<i32>} : memref<2x8x1xf32, #tpu.memory_space<vmem>>, vector<1x8x1xf32>,
    } else {
    }
    %c1_i32_6 = arith.constant 1 : i32
    %13 = arith.cmpi eq, %arg0, %c1_i32_6 : i32
    %14 = arith.extui %13 : i1 to i32
    %c0_i32_7 = arith.constant 0 : i32
    %15 = arith.cmpi ne, %14, %c0_i32_7 : i32
    scf.if %15 {
      %c0 = arith.constant 0 : index
      %c0_8 = arith.constant 0 : index
      %c0_9 = arith.constant 0 : index
      %16 = vector.load %arg9[%c0, %c0_8, %c0_9] : memref<2x8x1xf32, #tpu.memory_space<vmem>>, vector<1x8x1xf32>
      %17 = vector.shape_cast %16 : vector<1x8x1xf32> to vector<8x1xf32>
      %c1 = arith.constant 1 : index
      %c0_10 = arith.constant 0 : index
      %c0_11 = arith.constant 0 : index
      %18 = vector.load %arg9[%c1, %c0_10, %c0_11] : memref<2x8x1xf32, #tpu.memory_space<vmem>>, vector<1x8x1xf32>
      %19 = vector.shape_cast %18 : vector<1x8x1xf32> to vector<8x1xf32>
      %c2_i32 = arith.constant 2 : i32
      %20 = arith.muli %arg1, %c2_i32 : i32
      %c0_i32_12 = arith.constant 0 : i32
      %21 = arith.addi %20, %c0_i32_12 : i32
      %22 = arith.index_cast %21 : i32 to index
      %c0_13 = arith.constant 0 : index
      %c0_14 = arith.constant 0 : index
      %23 = vector.load %arg7[%22, %c0_13, %c0_14] : memref<2x8x256xf32, #tpu.memory_space<vmem>>, vector<1x8x256xf32>
      %24 = vector.shape_cast %23 : vector<1x8x256xf32> to vector<8x256xf32>
      %25 = vector.broadcast %17 : vector<8x1xf32> to vector<8x256xf32>
      %26 = arith.mulf %24, %25 : vector<8x256xf32>
      %27 = vector.broadcast %19 : vector<8x1xf32> to vector<8x256xf32>
      %28 = arith.addf %26, %27 : vector<8x256xf32>
      %cst = arith.constant 0.000000e+00 : f32
      %29 = vector.broadcast %cst : f32 to vector<8x256xf32>
      %30 = arith.maximumf %28, %29 : vector<8x256xf32>
      %c0_15 = arith.constant 0 : index
      %c0_16 = arith.constant 0 : index
      %c0_17 = arith.constant 0 : index
      %31 = vector.load %arg6[%c0_15, %c0_16, %c0_17] : memref<2x8x256xf32, #tpu.memory_space<vmem>>, vector<1x8x256xf32>
      %32 = vector.shape_cast %31 : vector<1x8x256xf32> to vector<8x256xf32>
      %33 = vector.shape_cast %30 : vector<8x256xf32> to vector<1x8x256xf32>
      tpu.vector_store %arg6[%c0_15, %c0_16, %c0_17], %33 {strides = array<i32>} : memref<2x8x256xf32, #tpu.memory_space<vmem>>, vector<1x8x256xf32>,
      %c2_i32_18 = arith.constant 2 : i32
      %34 = arith.muli %arg1, %c2_i32_18 : i32
      %c1_i32_19 = arith.constant 1 : i32
      %35 = arith.addi %34, %c1_i32_19 : i32
      %36 = arith.index_cast %35 : i32 to index
      %c0_20 = arith.constant 0 : index
      %c0_21 = arith.constant 0 : index
      %37 = vector.load %arg7[%36, %c0_20, %c0_21] : memref<2x8x256xf32, #tpu.memory_space<vmem>>, vector<1x8x256xf32>
      %38 = vector.shape_cast %37 : vector<1x8x256xf32> to vector<8x256xf32>
      %39 = vector.broadcast %17 : vector<8x1xf32> to vector<8x256xf32>
      %40 = arith.mulf %38, %39 : vector<8x256xf32>
      %41 = vector.broadcast %19 : vector<8x1xf32> to vector<8x256xf32>
      %42 = arith.addf %40, %41 : vector<8x256xf32>
      %cst_22 = arith.constant 0.000000e+00 : f32
      %43 = vector.broadcast %cst_22 : f32 to vector<8x256xf32>
      %44 = arith.maximumf %42, %43 : vector<8x256xf32>
      %c1_23 = arith.constant 1 : index
      %c0_24 = arith.constant 0 : index
      %c0_25 = arith.constant 0 : index
      %45 = vector.load %arg6[%c1_23, %c0_24, %c0_25] : memref<2x8x256xf32, #tpu.memory_space<vmem>>, vector<1x8x256xf32>
      %46 = vector.shape_cast %45 : vector<1x8x256xf32> to vector<8x256xf32>
      %47 = vector.shape_cast %44 : vector<8x256xf32> to vector<1x8x256xf32>
      tpu.vector_store %arg6[%c1_23, %c0_24, %c0_25], %47 {strides = array<i32>} : memref<2x8x256xf32, #tpu.memory_space<vmem>>, vector<1x8x256xf32>,
    } else {
    }
    return
  }
  func.func @transform_0(%arg0: i32, %arg1: i32) -> (i32, i32, i32) {
    %c1_i32 = arith.constant 1 : i32
    %0 = arith.subi %c1_i32, %arg0 : i32
    %1 = arith.muli %arg1, %0 : i32
    %c0_i32 = arith.constant 0 : i32
    %c0_i32_0 = arith.constant 0 : i32
    %c0_i32_1 = arith.constant 0 : i32
    return %1, %c0_i32, %c0_i32_0 : i32, i32, i32
  }
  func.func @transform_1(%arg0: i32, %arg1: i32) -> (i32, i32) {
    %c0_i32 = arith.constant 0 : i32
    %c0_i32_0 = arith.constant 0 : i32
    %c0_i32_1 = arith.constant 0 : i32
    return %c0_i32, %c0_i32_0 : i32, i32
  }
  func.func @transform_2(%arg0: i32, %arg1: i32) -> (i32, i32) {
    %c0_i32 = arith.constant 0 : i32
    %c0_i32_0 = arith.constant 0 : i32
    %c0_i32_1 = arith.constant 0 : i32
    return %c0_i32, %c0_i32_0 : i32, i32
  }
  func.func @transform_3(%arg0: i32, %arg1: i32) -> (i32, i32) {
    %c0_i32 = arith.constant 0 : i32
    %c0_i32_0 = arith.constant 0 : i32
    %c0_i32_1 = arith.constant 0 : i32
    return %c0_i32, %c0_i32_0 : i32, i32
  }
  func.func @transform_4(%arg0: i32, %arg1: i32) -> (i32, i32, i32) {
    %0 = arith.muli %arg1, %arg0 : i32
    %c0_i32 = arith.constant 0 : i32
    %c0_i32_0 = arith.constant 0 : i32
    %c0_i32_1 = arith.constant 0 : i32
    return %0, %c0_i32, %c0_i32_0 : i32, i32, i32
  }
}

</mosaic_0001>

<bundles_post_ra>
// kernel: conv_bn_relu.1
= control target key start
LH: loop header
LB: loop body
LE: loop exit
PB: predicated region body
PF: predicated region fallthrough
CT: control target
= control target key end

     0   :  { %s1099_s15 = smov 0   ;;  %s1101_s16 = smov 0   ;;  %s1391_s0 = inlined_call_operand.vmem [shape: f32[2,4,256], index: 0, kind: input, shape index: {}]   ;;  %s1392_s1 = inlined_call_operand.vmem [shape: f32[8,36], index: 1, kind: input, shape index: {}]   ;;  %s1393_s2 = inlined_call_operand.vmem [shape: f32[8,1], index: 2, kind: input, shape index: {}]   ;;  %s1394_s3 = inlined_call_operand.vmem [shape: f32[8,1], index: 3, kind: input, shape index: {}]   ;;  %s1395_s4 = inlined_call_operand.vmem [shape: f32[2,8,256], index: 4, kind: output, shape index: {}]  }
   0x1   :  { %s1103_s17 = smov 0  }
   0x2 LB: > { %s26_s18 = sadd.s32 1, %s1057_s16  ;;  %p889_p0 = scmp.ge.s32.totalorder %s1061_s17, 1  ;;  %s1061_s17 = sphi %s1103_s17, %s14_s17   ;;  %s1057_s16 = sphi %s1101_s16, %s1413_s16   ;;  %s1053_s15 = sphi %s1099_s15, %s1412_s15  }
   0x3   : > { %p28_p1 = scmp.ge.s32.totalorder %s26_s18, 2  ;;  %p186_p2 = scmp.lt.s32.totalorder %s1061_s17, 3 }
   0x5   : > { %s1415_s18 = smov (%p28_p1, %s26_s18), 0  ;;  %p187_p3 = pnand %p889_p0, %p186_p2 }
   0x6   : > { %p237_p4 = scmp.eq.s32.totalorder (!%p187_p3), %s1053_s15, 0 }
   0x7   : > { %190 = sbr.rel (%p187_p3) target bundleno = 725 (0x2d5), region = 36 }
   0xe   : > { %242 = sbr.rel (!%p237_p4) target bundleno = 21 (0x15), region = 40  ;;  %vm243_vm0 = vcmask (%p237_p4), 7168   ;;  %v1063_v0 = vmov (%p237_p4), 0.0  }
   0xf   : > { %244 = vst.msk [vmem:[#allocation3] sm:$0xff] (%p237_p4), %vm243_vm0, %v1063_v0  ;;  %245 = vst.msk [vmem:[#allocation3 + $0x8] sm:$0xff] (%p237_p4), %vm243_vm0, %v1063_v0 }
  0x15 PF: > { %p891_p5 = scmp.ne.s32.totalorder %s1053_s15, 0 }
  0x16   : > { %v1124_v1 = vld [vmem:[%s1391_s0] sm:$0xff] (!%p891_p5)  ;;  %v1129_v2 = vld [vmem:[%s1391_s0 + $0x8] sm:$0xff] (!%p891_p5)  ;;  %s1064_s23 = smov (!%p891_p5), 16   ;;  %s1065_s24 = smov (!%p891_p5), 1   ;;  %v1071_v7 = vmov (!%p891_p5), 0.0   ;;  %v249_v8 = vlaneseq (!%p891_p5)  ;;  %vm425_vm10 = vcmask (!%p891_p5), 1043456  }
  0x17   : > { %248 = sbr.rel (%p891_p5) target bundleno = 551 (0x227), region = 44  ;;  %v1133_v3 = vcombine.high (!%p891_p5), %v1124_v1, %v1124_v1  ;;  %v1137_v4 = vcombine.high (!%p891_p5), %v1129_v2, %v1129_v2  ;;  %s1066_s25 = smov (!%p891_p5), 15   ;;  %508 = vmatprep.mubr.f32.mxu0 (!%p891_p5), %v1071_v7  ;;  %702 = vmatprep.mubr.f32.mxu1 (!%p891_p5), %v1071_v7 }
  0x18   : > { %s1067_s26 = smov (!%p891_p5), 17   ;;  %s1068_s27 = smov (!%p891_p5), 112   ;;  %v1147_v9 = vand.u32 (!%p891_p5), 127, %v249_v8 }
  0x19   : > { %v974_v5 = vpack.i.bf16 (!%p891_p5), %v1133_v3, %v1124_v1  ;;  %v979_v6 = vpack.i.bf16 (!%p891_p5), %v1137_v4, %v1129_v2  ;;  %s1069_s28 = smov (!%p891_p5), 127   ;;  %s1070_s29 = smov (!%p891_p5), 113  }
  0x1a   : > { %s1072_s30 = smov (!%p891_p5), 111   ;;  %v1150_v10 = vadd.s32 (!%p891_p5), 128, %v1147_v9  ;;  %v256_v11 = vand.u32 (!%p891_p5), 15, %v1147_v9  ;;  %vm314_vm1 = vcmp.lt.s32.totalorder (!%p891_p5), %v1147_v9, 16  ;;  %vm340_vm2 = vcmp.lt.s32.totalorder (!%p891_p5), %v1147_v9, 1 }
  0x1b   : > { %975 = vrot.lane.b32.xlu1 (!%p891_p5), %v974_v5, %s1064_s23  ;;  %965 = vrot.lane.b32.xlu0 (!%p891_p5), %v974_v5, %s1065_s24  ;;  %vm276_vm4 = vcmp.ge.s32.totalorder (!%p891_p5), %v1147_v9, 16  ;;  %vm301_vm8 = vcmp.lt.s32.totalorder (!%p891_p5), %v1147_v9, 17  ;;  %vm327_vm9 = vcmp.lt.s32.totalorder (!%p891_p5), %v1147_v9, 15  ;;  %vm379_vm11 = vcmp.lt.s32.totalorder (!%p891_p5), %v1147_v9, 112 }
  0x1c   : > { %v263_v12 = vand.u32 (!%p891_p5), 15, %v1150_v10  ;;  %vm1161_vm5 = vcmp.ge.s32.totalorder (!%p891_p5), %v256_v11, 1  ;;  %vm1171_vm6 = vcmp.le.s32.totalorder (!%p891_p5), %v256_v11, 14  ;;  %vm353_vm12 = vcmp.lt.s32.totalorder (!%p891_p5), %v1147_v9, 127 }
  0x1d   : > { %vm1201_vm13 = vmand (!%p891_p5), %vm276_vm4, %vm1171_vm6  ;;  %vm279_vm15 = vcmp.lt.s32.totalorder (!%p891_p5), %v1150_v10, 240  ;;  %vm366_vm0 = vcmp.lt.s32.totalorder (!%p891_p5), %v1147_v9, 113 }
  0x1e   : > { %vm1156_vm3 = vcmp.ge.s32.totalorder %v263_v12, 1  ;;  %vm1183_vm7 = vcmp.le.s32.totalorder %v263_v12, 14  ;;  %vm1211_vm14 = vmand %vm276_vm4, %vm1161_vm5 }
  0x1f   : > { %980 = vrot.lane.b32.xlu1 %v979_v6, %s1064_s23  ;;  %970 = vrot.lane.b32.xlu0 %v979_v6, %s1065_s24 }
  0x23   : > { %990 = vrot.lane.b32.xlu1 %v974_v5, %s1066_s25  ;;  %985 = vrot.lane.b32.xlu0 %v974_v5, %s1067_s26 }
  0x27   : > { %1000 = vrot.lane.b32.xlu1 %v979_v6, %s1066_s25  ;;  %995 = vrot.lane.b32.xlu0 %v979_v6, %s1067_s26 }
  0x2b   : > { %1010 = vrot.lane.b32.xlu1 %v974_v5, %s1068_s27  ;;  %1005 = vrot.lane.b32.xlu0 %v974_v5, %s1069_s28 }
  0x2f   : > { %1020 = vrot.lane.b32.xlu1 %v979_v6, %s1068_s27  ;;  %1015 = vrot.lane.b32.xlu0 %v979_v6, %s1069_s28 }
  0x33   : > { %1030 = vrot.lane.b32.xlu1 %v979_v6, %s1070_s29  ;;  %1025 = vrot.lane.b32.xlu0 %v974_v5, %s1070_s29 }
  0x37   : > { %390 = vrot.lane.b32.xlu1 %v1133_v3, %s1072_s30  ;;  %388 = vrot.lane.b32.xlu0 %v1124_v1, %s1072_s30 }
  0x3b   : > { %594 = vrot.lane.b32.xlu1 %v1137_v4, %s1072_s30  ;;  %592 = vrot.lane.b32.xlu0 %v1129_v2, %s1072_s30 }
  0x8d   : > { %v976_v13 = vpop.permute.xlu1 %975  ;;  %v966_v14 = vpop.permute.xlu0 %965 }
  0x8e   : > { %v978_v17 = vunpack.i.h.bf16 %v976_v13  ;;  %v977_v18 = vunpack.i.l.bf16 %v976_v13  ;;  %v968_v19 = vunpack.i.h.bf16 %v966_v14  ;;  %v967_v20 = vunpack.i.l.bf16 %v966_v14 }
  0x90   : > { %v316_v21 = vsel %vm314_vm1, %v978_v17, %v977_v18  ;;  %v341_v22 = vsel %vm340_vm2, %v967_v20, %v968_v19  ;;  %v342_v23 = vsel %vm340_vm2, %v968_v19, %v967_v20  ;;  %v315_v27 = vsel %vm314_vm1, %v977_v18, %v978_v17 }
  0x91   : > { %v981_v25 = vpop.permute.xlu1 %980  ;;  %v971_v26 = vpop.permute.xlu0 %970  ;;  %v348_v28 = vsel %vm1156_vm3, %v341_v22, 0.0  ;;  %v321_v29 = vsel %vm276_vm4, %v316_v21, 0.0  ;;  %v347_v30 = vsel %vm1161_vm5, %v342_v23, 0.0  ;;  %v404_v38 = vrot.slane %v315_v27, 4 }
  0x92   : > { %v983_v31 = vunpack.i.h.bf16 %v981_v25  ;;  %v982_v32 = vunpack.i.l.bf16 %v981_v25  ;;  %v973_v33 = vunpack.i.h.bf16 %v971_v26  ;;  %v972_v34 = vunpack.i.l.bf16 %v971_v26 }
  0x93   : > { %v410_v42 = vrot.slane %v348_v28, 4  ;;  %v403_v44 = vrot.slane %v321_v29, 4  ;;  %v409_v45 = vrot.slane %v347_v30, 4 }
  0x94   : > { %v549_v36 = vsel %vm314_vm1, %v983_v31, %v982_v32  ;;  %v564_v37 = vsel %vm340_vm2, %v972_v34, %v973_v33  ;;  %v548_v39 = vsel %vm314_vm1, %v982_v32, %v983_v31  ;;  %v565_v52 = vsel %vm340_vm2, %v973_v33, %v972_v34  ;;  %vm1299_vm2 = vmand %vm279_vm15, %vm1156_vm3 }
  0x95   : > { %v991_v40 = vpop.permute.xlu1 %990  ;;  %v986_v41 = vpop.permute.xlu0 %985  ;;  %v567_v46 = vsel %vm1156_vm3, %v564_v37, 0.0  ;;  %v603_v53 = vrot.slane %v548_v39, 4  ;;  %v550_v55 = vsel %vm276_vm4, %v549_v36, 0.0  ;;  %v566_v34 = vsel %vm1161_vm5, %v565_v52, 0.0 }
  0x96   : > { %v993_v47 = vunpack.i.h.bf16 %v991_v40  ;;  %v992_v48 = vunpack.i.l.bf16 %v991_v40  ;;  %v988_v49 = vunpack.i.h.bf16 %v986_v41  ;;  %v987_v50 = vunpack.i.l.bf16 %v986_v41 }
  0x97   : > { %v609_v54 = vrot.slane %v567_v46, 4  ;;  %v602_v36 = vrot.slane %v550_v55, 4  ;;  %vm392_vm1 = vcmp.lt.s32.totalorder %v1147_v9, 111  ;;  %v608_v52 = vrot.slane %v566_v34, 4  ;;  %v292_v9 = vld [vmem:[%s1392_s1] sm:$0xff] }
  0x98   : > { %v302_v56 = vsel %vm301_vm8, %v987_v50, %v988_v49  ;;  %v328_v57 = vsel %vm327_vm9, %v992_v48, %v993_v47  ;;  %v303_v58 = vsel %vm301_vm8, %v988_v49, %v987_v50  ;;  %v329_v59 = vsel %vm327_vm9, %v993_v47, %v992_v48 }
  0x99   : > { %v1001_v60 = vpop.permute.xlu1 %1000  ;;  %v996_v61 = vpop.permute.xlu0 %995  ;;  %v309_v62 = vsel %vm1156_vm3, %v302_v56, 0.0  ;;  %v335_v63 = vsel %vm1183_vm7, %v328_v57, 0.0  ;;  %v308_v0 = vsel %vm1211_vm14, %v303_v58, 0.0  ;;  %v334_v5 = vsel %vm1201_vm13, %v329_v59, 0.0 }
  0x9a   : > { %v1003_v6 = vunpack.i.h.bf16 %v1001_v60  ;;  %v1002_v7 = vunpack.i.l.bf16 %v1001_v60  ;;  %v998_v8 = vunpack.i.h.bf16 %v996_v61  ;;  %v997_v11 = vunpack.i.l.bf16 %v996_v61 }
  0x9b   : > { %v427_v12 = vsel %vm425_vm10, %v309_v62, %v404_v38  ;;  %v429_v13 = vsel %vm425_vm10, %v335_v63, %v410_v42  ;;  %v426_v14 = vsel %vm425_vm10, %v308_v0, %v403_v44  ;;  %v428_v17 = vsel %vm425_vm10, %v334_v5, %v409_v45 }
  0x9c   : > { %v913_v18 = vpack.c.bf16 %v429_v13, %v427_v12  ;;  %v915_v19 = vpack.c.bf16 %v428_v17, %v426_v14  ;;  %v540_v20 = vsel %vm301_vm8, %v997_v11, %v998_v8  ;;  %v556_v21 = vsel %vm327_vm9, %v1002_v7, %v1003_v6 }
  0x9d   : > { %v1011_v22 = vpop.permute.xlu1 %1010  ;;  %v1006_v23 = vpop.permute.xlu0 %1005  ;;  %v543_v25 = vsel %vm1156_vm3, %v540_v20, 0.0  ;;  %v559_v26 = vsel %vm1183_vm7, %v556_v21, 0.0  ;;  %v541_v27 = vsel %vm301_vm8, %v998_v8, %v997_v11  ;;  %v557_v28 = vsel %vm327_vm9, %v1003_v6, %v1002_v7  ;;  %vm1319_vm3 = vmand %vm279_vm15, %vm1183_vm7 }
  0x9e   : > { %v1013_v29 = vunpack.i.h.bf16 %v1011_v22  ;;  %v1012_v30 = vunpack.i.l.bf16 %v1011_v22  ;;  %v1008_v31 = vunpack.i.h.bf16 %v1006_v23  ;;  %v1007_v32 = vunpack.i.l.bf16 %v1006_v23  ;;  %914 = vmatprep.subr.bf16.mxu0 %v913_v18 }
  0x9f   : > { %916 = vmatpush1.bf16.msra.mxu0 %v915_v19  ;;  %v625_v33 = vsel %vm425_vm10, %v543_v25, %v603_v53  ;;  %v627_v40 = vsel %vm425_vm10, %v559_v26, %v609_v54  ;;  %v542_v46 = vsel %vm1211_vm14, %v541_v27, 0.0  ;;  %v558_v47 = vsel %vm1201_vm13, %v557_v28, 0.0 }
  0xa0   : > { %v381_v37 = vsel %vm379_vm11, %v1013_v29, %v1012_v30  ;;  %v354_v38 = vsel %vm353_vm12, %v1007_v32, %v1008_v31  ;;  %v355_v39 = vsel %vm353_vm12, %v1008_v31, %v1007_v32  ;;  %v1266_v41 = vsel %vm379_vm11, %v1012_v30, %v1013_v29 }
  0xa1   : > { %v360_v42 = vsel %vm1171_vm6, %v354_v38, 0.0  ;;  %v1021_v44 = vpop.permute.xlu1 %1020  ;;  %v1016_v45 = vpop.permute.xlu0 %1015  ;;  %v387_v48 = vsel %vm279_vm15, %v381_v37, 0.0  ;;  %v361_v49 = vsel %vm1183_vm7, %v355_v39, 0.0  ;;  %v921_v56 = vpack.c.bf16 %v627_v40, %v625_v33 }
  0xa2   : > { %v1023_v50 = vunpack.i.h.bf16 %v1021_v44  ;;  %v1022_v53 = vunpack.i.l.bf16 %v1021_v44  ;;  %v1018_v54 = vunpack.i.h.bf16 %v1016_v45  ;;  %v1017_v55 = vunpack.i.l.bf16 %v1016_v45 }
  0xa3   : > { %v421_v57 = vrot.slane %v1266_v41, 4  ;;  %v415_v58 = vrot.slane %v360_v42, 4  ;;  %v624_v51 = vsel %vm425_vm10, %v542_v46, %v602_v36  ;;  %v626_v43 = vsel %vm425_vm10, %v558_v47, %v608_v52  ;;  %922 = vmatprep.subr.bf16.mxu1 %v921_v56 }
  0xa4   : > { %v416_v59 = vrot.slane %v361_v49, 4  ;;  %v589_v60 = vsel %vm379_vm11, %v1023_v50, %v1022_v53  ;;  %v572_v61 = vsel %vm353_vm12, %v1017_v55, %v1018_v54  ;;  %v573_v62 = vsel %vm353_vm12, %v1018_v54, %v1017_v55 }
  0xa5   : > { %v1031_v63 = vpop.permute.xlu1 %1030  ;;  %v1026_v0 = vpop.permute.xlu0 %1025  ;;  %v588_v5 = vsel %vm379_vm11, %v1022_v53, %v1023_v50  ;;  %v591_v6 = vsel %vm279_vm15, %v589_v60, 0.0  ;;  %v574_v7 = vsel %vm1171_vm6, %v572_v61, 0.0  ;;  %v575_v8 = vsel %vm1183_vm7, %v573_v62, 0.0 }
  0xa6   : > { %v621_v11 = vrot.slane %v591_v6, 4  ;;  %v614_v12 = vrot.slane %v574_v7, 4  ;;  %v615_v13 = vrot.slane %v575_v8, 4  ;;  %v923_v14 = vpack.c.bf16 %v626_v43, %v624_v51  ;;  %v730_v8 = vld [vmem:[#allocation3 + $0x8] sm:$0xff] }
  0xa7   : > { %v1033_v17 = vunpack.i.h.bf16 %v1031_v63  ;;  %v1032_v18 = vunpack.i.l.bf16 %v1031_v63  ;;  %v1028_v19 = vunpack.i.h.bf16 %v1026_v0  ;;  %v1027_v20 = vunpack.i.l.bf16 %v1026_v0  ;;  %v725_v63 = vld [vmem:[#allocation3] sm:$0xff] }
  0xa8   : > { %v422_v22 = vrot.slane %v387_v48, 4  ;;  %v620_v23 = vrot.slane %v588_v5, 4  ;;  %924 = vmatpush1.bf16.msra.mxu1 %v923_v14  ;;  %v431_v27 = vsel %vm425_vm10, %v1133_v3, %v416_v59  ;;  %v430_v28 = vsel %vm425_vm10, %v1124_v1, %v415_v58 }
  0xa9   : > { %v391_v25 = vpop.permute.xlu1 %390  ;;  %v389_v26 = vpop.permute.xlu0 %388  ;;  %v580_v15 = vsel %vm366_vm0, %v1032_v18, %v1033_v17  ;;  %v581_v29 = vsel %vm366_vm0, %v1033_v17, %v1032_v18  ;;  %v367_v30 = vsel %vm366_vm0, %v1027_v20, %v1028_v19  ;;  %v368_v31 = vsel %vm366_vm0, %v1028_v19, %v1027_v20 }
  0xaa   : > { %v394_v1 = vsel %vm392_vm1, %v391_v25, %v389_v26  ;;  %v374_v32 = vsel %vm1299_vm2, %v368_v31, 0.0  ;;  %v583_v33 = vsel %vm1299_vm2, %v581_v29, 0.0  ;;  %v629_v34 = vsel %vm425_vm10, %v1137_v4, %v615_v13 }
  0xab   : > { %v393_v35 = vsel %vm392_vm1, %v389_v26, %v391_v25  ;;  %v433_v10 = vsel %vm425_vm10, %v374_v32, %v422_v22  ;;  %v631_v36 = vsel %vm425_vm10, %v583_v33, %v621_v11  ;;  %v628_v37 = vsel %vm425_vm10, %v1129_v2, %v614_v12 }
  0xac   : > { %v917_v38 = vpack.c.bf16 %v433_v10, %v431_v27  ;;  %v925_v39 = vpack.c.bf16 %v631_v36, %v629_v34  ;;  %v373_v40 = vsel %vm1161_vm5, %v367_v30, 0.0  ;;  %v582_v41 = vsel %vm1161_vm5, %v580_v15, 0.0 }
  0xad   : > { %v595_v42 = vpop.permute.xlu1 %594  ;;  %v593_v4 = vpop.permute.xlu0 %592  ;;  %v400_v44 = vsel %vm1319_vm3, %v394_v1, 0.0  ;;  %v432_v45 = vsel %vm425_vm10, %v373_v40, %v421_v57  ;;  %v630_v46 = vsel %vm425_vm10, %v582_v41, %v620_v23  ;;  %v399_v50 = vsel %vm1171_vm6, %v393_v35, 0.0 }
  0xae   : > { %v597_v2 = vsel %vm392_vm1, %v595_v42, %v593_v4  ;;  %918 = vmatprep.subr.bf16.mxu0 %v917_v38  ;;  %926 = vmatprep.subr.bf16.mxu1 %v925_v39  ;;  %v919_v47 = vpack.c.bf16 %v432_v45, %v430_v28  ;;  %v927_v48 = vpack.c.bf16 %v630_v46, %v628_v37  ;;  %vm434_vm4 = vcmask 293888  }
  0xaf   : > { %v596_v16 = vsel %vm392_vm1, %v593_v4, %v595_v42  ;;  %v599_v49 = vsel %vm1319_vm3, %v597_v2, 0.0  ;;  %vm727_vm5 = vcmask 7168  }
  0xb0   : > { %920 = vmatpush1.bf16.msra.mxu0 %v919_v47  ;;  %928 = vmatpush1.bf16.msra.mxu1 %v927_v48  ;;  %v598_v52 = vsel %vm1171_vm6, %v596_v16, 0.0 }
  0xb1   : > { %892 = vmatprep.subr.msk.mxu0 %vm425_vm10, %v400_v44  ;;  %896 = vmatprep.subr.msk.mxu1 %vm425_vm10, %v599_v49 }
  0xb4   : > { %893 = vmatpush1.msk.msra.mxu0 %vm425_vm10, %v399_v50  ;;  %897 = vmatpush1.msk.msra.mxu1 %vm425_vm10, %v598_v52 }
  0xb5   : > { %894 = vmatmul.mubr.msk.f32.vlgmr.msra.gmra.mrb[0].mxu0 %vm434_vm4, %v292_v9  ;;  %898 = vmatmul.mubr.msk.f32.vlgmr.msra.gmra.mrb[0].mxu1 %vm434_vm4, %v292_v9 }
 0x188   : > { %v510_v53 = vpop.f32.mrb[0].mxu0  ;;  %v704_v54 = vpop.f32.mrb[0].mxu1 }
 0x189   : > { %519 = vst [vmem:[#allocation2] sm:$0xff] %v510_v53  ;;  %v512_v24 = vpop.f32.mrb[1].mxu0  ;;  %899 = vst [vmem:[#allocation2 + $0x10] sm:$0xff] %v704_v54  ;;  %v706_v55 = vpop.f32.mrb[1].mxu1  ;;  %v525_v56 = vmul.f32 %v510_v53, %v510_v53  ;;  %v719_v57 = vmul.f32 %v704_v54, %v704_v54 }
 0x18a   : > { %520 = vst [vmem:[#allocation2 + $0x8] sm:$0xff] %v512_v24  ;;  %v526_v58 = vmul.f32 %v512_v24, %v512_v24  ;;  %900 = vst [vmem:[#allocation2 + $0x18] sm:$0xff] %v706_v55  ;;  %v720_v51 = vmul.f32 %v706_v55, %v706_v55  ;;  %v521_v43 = vadd.f32 %v512_v24, %v510_v53 }
 0x18b   : > { %v715_v59 = vadd.f32 %v706_v55, %v704_v54 }
 0x18c   : > { %522 = vadd.xlane.f32.xlu0 %v521_v43  ;;  %v527_v60 = vadd.f32 %v526_v58, %v525_v56  ;;  %v721_v61 = vadd.f32 %v720_v51, %v719_v57 }
 0x18e   : > { %528 = vadd.xlane.f32.xlu1 %v527_v60 }
 0x190   : > { %716 = vadd.xlane.f32.xlu0 %v715_v59 }
 0x194   : > { %722 = vadd.xlane.f32.xlu0 %v721_v61 }
 0x219   : > { %v523_v62 = vpop.xlane.xlu0 %522 }
 0x21b   : > { %v529_v7 = vpop.xlane.xlu1 %528 }
 0x21d   : > { %v717_v0 = vpop.xlane.xlu0 %716 }
 0x21e   : > { %v718_v5 = vadd.f32 %v717_v0, %v523_v62 }
 0x220   : > { %v726_v6 = vadd.f32 %v725_v63, %v718_v5 }
 0x221   : > { %v723_v11 = vpop.xlane.xlu0 %722 }
 0x222   : > { %728 = vst.msk [vmem:[#allocation3] sm:$0xff] %vm727_vm5, %v726_v6  ;;  %v724_v12 = vadd.f32 %v723_v11, %v529_v7 }
 0x224   : > { %v731_v13 = vadd.f32 %v730_v8, %v724_v12 }
 0x226   : > { %732 = vst.msk [vmem:[#allocation3 + $0x8] sm:$0xff] %vm727_vm5, %v731_v13 }
 0x227 PF: > { %p733_p6 = scmp.eq.s32.totalorder %s1053_s15, 1 }
 0x228   : > { %v746_v25 = vld [vmem:[%s1393_s2] sm:$0xff] (%p733_p6)  ;;  %vm750_vm6 = vcmask (%p733_p6), 7168  }
 0x229   : > { %737 = sbr.rel (!%p733_p6) target bundleno = 584 (0x248), region = 48  ;;  %v738_v14 = vld [vmem:[#allocation3] sm:$0xff] (%p733_p6) }
 0x22a   : > { %v739_v18 = vmul.f32 (%p733_p6), 0.001953125, %v738_v14  ;;  %v752_v28 = vld [vmem:[%s1394_s3] sm:$0xff] (%p733_p6) }
 0x22c   : > { %v743_v20 = vmul.f32 (%p733_p6), %v739_v18, %v739_v18 }
 0x22d   : > { %v741_v17 = vld [vmem:[#allocation3 + $0x8] sm:$0xff] (%p733_p6) }
 0x22e   : > { %v742_v19 = vmul.f32 (%p733_p6), 0.001953125, %v741_v17 }
 0x230   : > { %v744_v21 = vsub.f32 %v742_v19, %v743_v20 }
 0x232   : > { %v745_v22 = vmax.f32 %v744_v21, 0.0 }
 0x234   : > { %v747_v23 = vadd.f32 1e-05, %v745_v22 }
 0x236   : > { %1036 = vrsqrt.f32 %v747_v23 }
 0x240   : > { %v1037_v26 = vpop.eup %1036 }
 0x241   : > { %v749_v27 = vmul.f32 %v1037_v26, %v746_v25 }
 0x243   : > { %751 = vst.msk [vmem:[#allocation4] sm:$0xff] %vm750_vm6, %v749_v27  ;;  %v753_v15 = vmul.f32 %v749_v27, %v739_v18 }
 0x245   : > { %v754_v29 = vsub.f32 %v752_v28, %v753_v15 }
 0x247   : > { %756 = vst.msk [vmem:[#allocation4 + $0x8] sm:$0xff] %vm750_vm6, %v754_v29 }
 0x248 PF: > { %p902_p7 = scmp.ne.s32.totalorder %s1053_s15, 1 }
 0x249   : > { %v1073_v31 = vmov (!%p902_p7), 0   ;;  %v767_v1 = vld [vmem:[#allocation2] sm:$0xff] (!%p902_p7)  ;;  %v768_v33 = vld [vmem:[#allocation2 + $0x8] sm:$0xff] (!%p902_p7)  ;;  %v903_v34 = vld [vmem:[#allocation2 + $0x10] sm:$0xff] (!%p902_p7) }
 0x24a   : > { %759 = sbr.rel (%p902_p7) target bundleno = 725 (0x2d5), region = 52  ;;  %v760_v30 = vld [vmem:[#allocation4] sm:$0xff] (!%p902_p7)  ;;  %1038 = vset.pattern.permute.xlu0 (!%p902_p7), %v1073_v31  ;;  %v904_v35 = vld [vmem:[#allocation2 + $0x18] sm:$0xff] (!%p902_p7) }
 0x24b   : > { %771 = vperm.xlu0 (!%p902_p7), %1038, %v760_v30  }
 0x24e   : > { %v762_v3 = vld [vmem:[#allocation4 + $0x8] sm:$0xff] (!%p902_p7) }
 0x24f   : > { %778 = vperm.xlu0 (!%p902_p7), %1038, %v762_v3  }
 0x2ca   : > { %v772_v32 = vpop.permute.xlu0 %771 }
 0x2cb   : > { %v774_v10 = vmul.f32 %v772_v32, %v767_v1  ;;  %v775_v36 = vmul.f32 %v772_v32, %v768_v33  ;;  %v793_v37 = vmul.f32 %v903_v34, %v772_v32  ;;  %v794_v38 = vmul.f32 %v904_v35, %v772_v32 }
 0x2ce   : > { %v779_v39 = vpop.permute.xlu0 %778 }
 0x2cf   : > { %v781_v40 = vadd.f32 %v779_v39, %v774_v10  ;;  %v782_v41 = vadd.f32 %v779_v39, %v775_v36  ;;  %v795_v42 = vadd.f32 %v793_v37, %v779_v39  ;;  %v796_v4 = vadd.f32 %v794_v38, %v779_v39 }
 0x2d1   : > { %v783_v44 = vmax.f32 %v781_v40, 0.0  ;;  %v784_v45 = vmax.f32 %v782_v41, 0.0  ;;  %v797_v46 = vmax.f32 %v795_v42, 0.0  ;;  %v798_v2 = vmax.f32 %v796_v4, 0.0 }
 0x2d3   : > { %785 = vst [vmem:[%s1395_s4] sm:$0xff] %v783_v44  ;;  %786 = vst [vmem:[%s1395_s4 + $0x8] sm:$0xff] %v784_v45 }
 0x2d4   : > { %905 = vst [vmem:[%s1395_s4 + $0x10] sm:$0xff] %v797_v46  ;;  %906 = vst [vmem:[%s1395_s4 + $0x18] sm:$0xff] %v798_v2 }
 0x2d5 PF: > { %s14_s17 = sadd.s32 1, %s1061_s17   ;;  %s1412_s15 = smov %s1057_s16 }
 0x2d6   : > { %p11_p8 = scmp.ge.s32.totalorder %s14_s17, 4   ;;  %s1413_s16 = smov %s1415_s18 }
 0x2d8   :  { %13 = sbr.rel (!%p11_p8) target bundleno = 2 (0x2), region = 92 }

</bundles_post_ra>
